<compile_context>
chip_gen: v7x
topology: tpu7x:2x2x1
jax: 0.10.0
libtpu: 0.0.40
codegen_flags: <defaults>
</compile_context>

<pallas_src>
import jax
import jax.numpy as jnp
from jax.experimental import pallas as pl
from jax.experimental.pallas import tpu as pltpu

INPUTS = 5
HIDDEN = 128
N_ACTIONS = 3
HEADS = N_ACTIONS + 1          # 3 action logits + 1 value, fused in one matmul
DEFAULT_TILE_B = 16384         # lane-dense layout -> ~14 MiB/step


def actor_critic_kernel(x_ref, w1_ref, b1_ref, wh_ref, bh_ref,
                        probs_ref, value_ref):
    # Feature-major (lane-dense) layout: batch is the 128-lane axis.
    #   x_ref:     (INPUTS, TB)
    #   w1_ref:    (HIDDEN, INPUTS)   -- PyTorch (out, in) layout, used as-is
    #   b1_ref:    (HIDDEN, 1)
    #   wh_ref:    (HEADS, HIDDEN)    -- action_head + value_head fused on rows
    #   bh_ref:    (HEADS, 1)
    #   probs_ref: (N_ACTIONS, TB)
    #   value_ref: (1, TB)
    x = x_ref[...]

    # affine + ReLU:  h^T = W1 @ x^T + b1   -> (HIDDEN, TB)
    h = jnp.dot(w1_ref[...], x, preferred_element_type=jnp.float32) + b1_ref[...]
    h = jnp.maximum(h, 0.0)

    # fused heads:    y^T = Wh @ h^T + bh   -> (HEADS, TB)
    y = jnp.dot(wh_ref[...], h, preferred_element_type=jnp.float32) + bh_ref[...]

    # numerically stable softmax over the 3 action rows (tiny sublane
    # reduction; the batch/lane axis stays fully dense).
    logits = y[:N_ACTIONS, :]
    m = jnp.max(logits, axis=0, keepdims=True)
    e = jnp.exp(logits - m)
    # approx reciprocal runs on the EUP slot (essentially free); probs sum to 1
    # only to ~1e-3 -- renormalize downstream if they feed log-prob losses.
    inv = pl.reciprocal(jnp.sum(e, axis=0, keepdims=True), approx=True)

    probs_ref[...] = e * inv
    value_ref[...] = y[N_ACTIONS:, :]


def _choose_tile_b(batch, tile_b):
    # Small batches: one full-extent block (block dims == array dims, so no
    # 128-lane divisibility constraint and no padding of any kind).
    if batch <= 256:
        return batch
    # Otherwise tile the lane (batch) axis in multiples of 128.  Cap the tile
    # at ~half the batch so the grid has >= 2 steps and v7x's two TensorCores
    # both get work under dimension_semantics=("parallel",); no-op on v5e/v6e.
    tb = min(tile_b, (batch + 1) // 2)
    return max(128, (tb // 128) * 128)


def actor_critic_forward_t(x_t, params, tile_b=DEFAULT_TILE_B):
    """Feature-major fast path.

    x_t: (INPUTS, B) float32.
    Returns (probs_t (N_ACTIONS, B), values_t (1, B)).
    No wrapper padding and no post-hoc slice copies; a non-divisible last
    batch block is masked by Pallas.
    """
    w1, b1, wh, bh = params
    B = x_t.shape[1]
    tb = _choose_tile_b(B, tile_b)
    grid = (pl.cdiv(B, tb),)

    probs_t, values_t = pl.pallas_call(
        actor_critic_kernel,
        out_shape=(jax.ShapeDtypeStruct((N_ACTIONS, B), jnp.float32),
                   jax.ShapeDtypeStruct((1, B), jnp.float32)),
        grid=grid,
        in_specs=[
            pl.BlockSpec((INPUTS, tb), lambda i: (0, i)),       # x tile (lane-dense)
            pl.BlockSpec((HIDDEN, INPUTS), lambda i: (0, 0)),   # w1 (VMEM-resident)
            pl.BlockSpec((HIDDEN, 1), lambda i: (0, 0)),        # b1
            pl.BlockSpec((HEADS, HIDDEN), lambda i: (0, 0)),    # fused head weights
            pl.BlockSpec((HEADS, 1), lambda i: (0, 0)),         # fused head bias
        ],
        out_specs=[
            pl.BlockSpec((N_ACTIONS, tb), lambda i: (0, i)),    # probs (lane-dense)
            pl.BlockSpec((1, tb), lambda i: (0, i)),            # value (lane-dense)
        ],
        compiler_params=pltpu.CompilerParams(
            dimension_semantics=("parallel",),
            vmem_limit_bytes=32 * 1024 * 1024),
    )(x_t, w1, b1, wh, bh)
    return probs_t, values_t


def actor_critic_forward(x, params, tile_b=DEFAULT_TILE_B):
    """Batch-major wrapper matching the PyTorch interface.

    x: (B, INPUTS) -> (action_prob (B, 3), state_values (B, 1)).
    The transposes here are extra HBM passes unless fused by a surrounding
    jit; prefer actor_critic_forward_t when the producer/consumer can use the
    feature-major layout.
    """
    probs_t, values_t = actor_critic_forward_t(x.T, params, tile_b=tile_b)
    return probs_t.T, values_t.T


def init_params(key):
    """Deterministic init mimicking PyTorch nn.Linear default
    (uniform +-1/sqrt(fan_in)); weights kept in PyTorch (out, in) layout,
    head weights/biases fused along the out axis."""
    k1, k2, k3, k4, k5, k6 = jax.random.split(key, 6)

    def unif(k, shape, fan_in):
        bound = 1.0 / jnp.sqrt(jnp.float32(fan_in))
        return jax.random.uniform(k, shape, jnp.float32, -bound, bound)

    w1 = unif(k1, (HIDDEN, INPUTS), INPUTS)      # affine
    b1 = unif(k2, (HIDDEN, 1), INPUTS)
    w2 = unif(k3, (N_ACTIONS, HIDDEN), HIDDEN)   # action head
    b2 = unif(k4, (N_ACTIONS, 1), HIDDEN)
    w3 = unif(k5, (1, HIDDEN), HIDDEN)           # value head
    b3 = unif(k6, (1, 1), HIDDEN)

    wh = jnp.concatenate([w2, w3], axis=0)       # (HEADS, HIDDEN)
    bh = jnp.concatenate([b2, b3], axis=0)       # (HEADS, 1)
    return (w1, b1, wh, bh)


def reference_forward(x, params):
    """Pure-JAX reference matching the PyTorch forward (batch-major)."""
    w1, b1, wh, bh = params
    h = jnp.maximum(x @ w1.T + b1[:, 0], 0.0)
    y = h @ wh.T + bh[:, 0]
    probs = jax.nn.softmax(y[:, :N_ACTIONS], axis=-1)
    values = y[:, N_ACTIONS:]
    return probs, values


def _check(x, params, tile_b):
    B = x.shape[0]
    ref_probs, ref_values = reference_forward(x, params)

    # feature-major fast path
    probs_t, values_t = actor_critic_forward_t(x.T, params, tile_b=tile_b)
    probs_t = jax.block_until_ready(probs_t)
    values_t = jax.block_until_ready(values_t)
    assert probs_t.shape == (N_ACTIONS, B)
    assert values_t.shape == (1, B)
    # probs use approx reciprocal (EUP vrcp) -> slightly looser tolerance
    assert jnp.allclose(probs_t.T, ref_probs, atol=5e-3, rtol=5e-3)
    assert jnp.allclose(jnp.sum(probs_t, axis=0), 1.0, atol=5e-3)
    # value path is exact f32
    assert jnp.allclose(values_t.T, ref_values, atol=1e-5, rtol=1e-5)

    # batch-major convenience wrapper (PyTorch-shaped interface)
    probs, values = actor_critic_forward(x, params, tile_b=tile_b)
    probs = jax.block_until_ready(probs)
    values = jax.block_until_ready(values)
    assert probs.shape == (B, N_ACTIONS)
    assert values.shape == (B, 1)
    assert jnp.allclose(probs, ref_probs, atol=5e-3, rtol=5e-3)
    assert jnp.allclose(values, ref_values, atol=1e-5, rtol=1e-5)


if __name__ == "__main__":
    key = jax.random.PRNGKey(0)
    pkey, xkey = jax.random.split(key)
    params = init_params(pkey)

    # small single-tile batch (grid = (1,), block dims == full array dims)
    x_small = jax.random.normal(xkey, (8, INPUTS), dtype=jnp.float32)
    _check(x_small, params, tile_b=DEFAULT_TILE_B)

    # multi-tile batch with a partial last block (300 = 2*128 + 44):
    # exercises the grid + implicit last-block masking path (no jnp.pad).
    x_mid = jax.random.normal(jax.random.fold_in(xkey, 1), (300, INPUTS),
                              dtype=jnp.float32)
    _check(x_mid, params, tile_b=128)

    print("KERNEL_OK")
</pallas_src>

<mosaic_0001>
module attributes {stable_mosaic.version = 11 : i64} {
  func.func @actor_critic_kernel(%arg0: i32, %arg1: memref<5x8xf32, #tpu.memory_space<vmem>>, %arg2: memref<128x5xf32, #tpu.memory_space<vmem>>, %arg3: memref<128x1xf32, #tpu.memory_space<vmem>>, %arg4: memref<4x128xf32, #tpu.memory_space<vmem>>, %arg5: memref<4x1xf32, #tpu.memory_space<vmem>>, %arg6: memref<3x8xf32, #tpu.memory_space<vmem>>, %arg7: memref<1x8xf32, #tpu.memory_space<vmem>>) attributes {dimension_semantics = [#tpu.dimension_semantics<parallel>], iteration_bounds = array<i64: 1>, scalar_prefetch = 0 : i64, scratch_operands = 0 : i64, tpu.core_type = #tpu.core_type<tc>, window_params = [{transform_indices = @transform_0, window_bounds = array<i64: 5, 8>}, {pipeline_mode = #tpu.pipeline_mode<synchronous>, transform_indices = @transform_1, window_bounds = array<i64: 128, 5>}, {pipeline_mode = #tpu.pipeline_mode<synchronous>, transform_indices = @transform_2, window_bounds = array<i64: 128, 1>}, {pipeline_mode = #tpu.pipeline_mode<synchronous>, transform_indices = @transform_3, window_bounds = array<i64: 4, 128>}, {pipeline_mode = #tpu.pipeline_mode<synchronous>, transform_indices = @transform_4, window_bounds = array<i64: 4, 1>}, {transform_indices = @transform_5, window_bounds = array<i64: 3, 8>}, {transform_indices = @transform_6, window_bounds = array<i64: 1, 8>}]} {
    %c0 = arith.constant 0 : index
    %c0_0 = arith.constant 0 : index
    %0 = vector.load %arg1[%c0, %c0_0] : memref<5x8xf32, #tpu.memory_space<vmem>>, vector<5x8xf32>
    %c0_1 = arith.constant 0 : index
    %c0_2 = arith.constant 0 : index
    %1 = vector.load %arg2[%c0_1, %c0_2] : memref<128x5xf32, #tpu.memory_space<vmem>>, vector<128x5xf32>
    %cst = arith.constant dense<0.000000e+00> : vector<128x8xf32>
    %2 = tpu.matmul %1, %0, %cst {dimension_numbers = #tpu.dot_dimension_numbers<[1], [0], [0], [1], [0, 0, 1, 1], [], []>} : vector<128x5xf32>, vector<5x8xf32>, vector<128x8xf32> -> vector<128x8xf32>
    %c0_3 = arith.constant 0 : index
    %c0_4 = arith.constant 0 : index
    %3 = vector.load %arg3[%c0_3, %c0_4] : memref<128x1xf32, #tpu.memory_space<vmem>>, vector<128x1xf32>
    %4 = vector.broadcast %3 : vector<128x1xf32> to vector<128x8xf32>
    %5 = arith.addf %2, %4 : vector<128x8xf32>
    %cst_5 = arith.constant 0.000000e+00 : f32
    %6 = vector.broadcast %cst_5 : f32 to vector<128x8xf32>
    %7 = arith.maximumf %5, %6 : vector<128x8xf32>
    %c0_6 = arith.constant 0 : index
    %c0_7 = arith.constant 0 : index
    %8 = vector.load %arg4[%c0_6, %c0_7] : memref<4x128xf32, #tpu.memory_space<vmem>>, vector<4x128xf32>
    %cst_8 = arith.constant dense<0.000000e+00> : vector<4x8xf32>
    %9 = tpu.matmul %8, %7, %cst_8 {dimension_numbers = #tpu.dot_dimension_numbers<[1], [0], [0], [1], [0, 0, 1, 1], [], []>} : vector<4x128xf32>, vector<128x8xf32>, vector<4x8xf32> -> vector<4x8xf32>
    %c0_9 = arith.constant 0 : index
    %c0_10 = arith.constant 0 : index
    %10 = vector.load %arg5[%c0_9, %c0_10] : memref<4x1xf32, #tpu.memory_space<vmem>>, vector<4x1xf32>
    %11 = vector.broadcast %10 : vector<4x1xf32> to vector<4x8xf32>
    %12 = arith.addf %9, %11 : vector<4x8xf32>
    %13 = vector.extract_strided_slice %12 {offsets = [0, 0], sizes = [3, 8], strides = [1, 1]} : vector<4x8xf32> to vector<3x8xf32>
    %cst_11 = arith.constant dense<0xFF800000> : vector<8xf32>
    %14 = vector.multi_reduction <maximumf>, %13, %cst_11 [0] : vector<3x8xf32> to vector<8xf32>
    %15 = vector.shape_cast %14 : vector<8xf32> to vector<1x8xf32>
    %16 = vector.broadcast %15 : vector<1x8xf32> to vector<3x8xf32>
    %17 = arith.subf %13, %16 : vector<3x8xf32>
    %18 = math.exp %17 : vector<3x8xf32>
    %cst_12 = arith.constant dense<0.000000e+00> : vector<8xf32>
    %19 = vector.multi_reduction <add>, %18, %cst_12 [0] : vector<3x8xf32> to vector<8xf32>
    %20 = vector.shape_cast %19 : vector<8xf32> to vector<1x8xf32>
    %21 = tpu.reciprocal %20 {approx = true} : vector<1x8xf32> -> vector<1x8xf32>
    %22 = vector.broadcast %21 : vector<1x8xf32> to vector<3x8xf32>
    %23 = arith.mulf %18, %22 : vector<3x8xf32>
    %c0_13 = arith.constant 0 : index
    %c0_14 = arith.constant 0 : index
    %24 = vector.load %arg6[%c0_13, %c0_14] : memref<3x8xf32, #tpu.memory_space<vmem>>, vector<3x8xf32>
    tpu.vector_store %arg6[%c0_13, %c0_14], %23 {strides = array<i32>} : memref<3x8xf32, #tpu.memory_space<vmem>>, vector<3x8xf32>,
    %25 = vector.extract_strided_slice %12 {offsets = [3, 0], sizes = [1, 8], strides = [1, 1]} : vector<4x8xf32> to vector<1x8xf32>
    %c0_15 = arith.constant 0 : index
    %c0_16 = arith.constant 0 : index
    %26 = vector.load %arg7[%c0_15, %c0_16] : memref<1x8xf32, #tpu.memory_space<vmem>>, vector<1x8xf32>
    tpu.vector_store %arg7[%c0_15, %c0_16], %25 {strides = array<i32>} : memref<1x8xf32, #tpu.memory_space<vmem>>, vector<1x8xf32>,
    return
  }
  func.func @transform_0(%arg0: i32) -> (i32, i32) {
    %c0_i32 = arith.constant 0 : i32
    %c0_i32_0 = arith.constant 0 : i32
    return %c0_i32, %arg0 : i32, i32
  }
  func.func @transform_1(%arg0: i32) -> (i32, i32) {
    %c0_i32 = arith.constant 0 : i32
    %c0_i32_0 = arith.constant 0 : i32
    %c0_i32_1 = arith.constant 0 : i32
    return %c0_i32, %c0_i32_0 : i32, i32
  }
  func.func @transform_2(%arg0: i32) -> (i32, i32) {
    %c0_i32 = arith.constant 0 : i32
    %c0_i32_0 = arith.constant 0 : i32
    %c0_i32_1 = arith.constant 0 : i32
    return %c0_i32, %c0_i32_0 : i32, i32
  }
  func.func @transform_3(%arg0: i32) -> (i32, i32) {
    %c0_i32 = arith.constant 0 : i32
    %c0_i32_0 = arith.constant 0 : i32
    %c0_i32_1 = arith.constant 0 : i32
    return %c0_i32, %c0_i32_0 : i32, i32
  }
  func.func @transform_4(%arg0: i32) -> (i32, i32) {
    %c0_i32 = arith.constant 0 : i32
    %c0_i32_0 = arith.constant 0 : i32
    %c0_i32_1 = arith.constant 0 : i32
    return %c0_i32, %c0_i32_0 : i32, i32
  }
  func.func @transform_5(%arg0: i32) -> (i32, i32) {
    %c0_i32 = arith.constant 0 : i32
    %c0_i32_0 = arith.constant 0 : i32
    return %c0_i32, %arg0 : i32, i32
  }
  func.func @transform_6(%arg0: i32) -> (i32, i32) {
    %c0_i32 = arith.constant 0 : i32
    %c0_i32_0 = arith.constant 0 : i32
    return %c0_i32, %arg0 : i32, i32
  }
}

</mosaic_0001>

<bundles_post_ra>
// kernel: tpu_custom_call.1
= control target key start
LH: loop header
LB: loop body
LE: loop exit
PB: predicated region body
PF: predicated region fallthrough
CT: control target
= control target key end

     0   :  { %12 = vsyncpa [#allocation3], 0  ;;  %vm186_vm0 = vcmask 1044480   ;;  %vm137_vm1 = vcmask 39936   ;;  %v675_v4 = vmov 0   ;;  %s872_s0 = inlined_call_operand.vmem [shape: f32[5,8], index: 0, kind: input, shape index: {}]   ;;  %s873_s1 = inlined_call_operand.vmem [shape: f32[128,5], index: 1, kind: input, shape index: {}]   ;;  %s874_s2 = inlined_call_operand.vmem [shape: f32[128,1], index: 2, kind: input, shape index: {}]   ;;  %s875_s3 = inlined_call_operand.vmem [shape: f32[4,128], index: 3, kind: input, shape index: {}]   ;;  %s876_s4 = inlined_call_operand.vmem [shape: f32[4,1], index: 4, kind: input, shape index: {}]   ;;  %s877_s5 = inlined_call_operand.hbm [shape: f32[3,8], index: 5, kind: output, shape index: {0}]   ;;  %s878_s6 = inlined_call_operand.hbm [shape: f32[1,8], index: 6, kind: output, shape index: {1}]  }
   0x1   :  { %v24_v0 = vld [vmem:[%s872_s0] sm:$0x1f]  ;;  %v26_v2 = vld [vmem:[%s873_s1 + $0x8] sm:$0xff]  ;;  %v27_v3 = vld [vmem:[%s873_s1 + $0x10] sm:$0xff]  ;;  %621 = vset.pattern.permute.xlu0 %v675_v4  ;;  %622 = vset.pattern.permute.xlu1 %v675_v4 }
   0x2   :  { %v25_v1 = vld [vmem:[%s873_s1] sm:$0xff]  ;;  %530 = vmatprep.subr.msk.mxu0 %vm186_vm0, %v24_v0  ;;  %v28_v5 = vld [vmem:[%s873_s1 + $0x18] sm:$0xff]  ;;  %v43_v8 = vld [vmem:[%s874_s2 + $0x10] sm:$0xff] }
   0x3   :  { %532 = vmatprep.mubr.msk.f32.mxu0 %vm137_vm1, %v25_v1  ;;  %531 = vmatpush3.msk.msra.mxu0 %vm186_vm0, %v24_v0  ;;  %v29_v6 = vld [vmem:[%s873_s1 + $0x20] sm:$0xff]  ;;  %v42_v9 = vld [vmem:[%s874_s2 + $0x8] sm:$0xff]  ;;  %v44_v11 = vld [vmem:[%s874_s2 + $0x18] sm:$0xff] }
   0x4   :  { %533 = vmatmul.mubr.msk.f32.vlgmr.msra.gmra.mrb[0].mxu0 %vm137_vm1, %v26_v2  ;;  %v41_v7 = vld [vmem:[%s874_s2] sm:$0xff]  ;;  %69 = vperm.xlu1 %622, %v43_v8   ;;  %v30_v10 = vld [vmem:[%s873_s1 + $0x28] sm:$0xff]  ;;  %v31_v12 = vld [vmem:[%s873_s1 + $0x30] sm:$0xff] }
   0x5   :  { %535 = vmatprep.mubr.msk.f32.mxu0 %vm137_vm1, %v27_v3  ;;  %59 = vperm.xlu0 %621, %v41_v7   ;;  %v45_v13 = vld [vmem:[%s874_s2 + $0x20] sm:$0xff] }
   0x8   :  { %536 = vmatmul.mubr.msk.f32.gmra.mrb[2].mxu0 %vm137_vm1, %v28_v5  ;;  %74 = vperm.xlu1 %622, %v44_v11  }
   0x9   :  { %538 = vmatprep.mubr.msk.f32.mxu0 %vm137_vm1, %v29_v6  ;;  %64 = vperm.xlu0 %621, %v42_v9  }
   0xc   :  { %539 = vmatmul.mubr.msk.f32.gmra.mrb[4].mxu0 %vm137_vm1, %v30_v10 }
   0xd   :  { %13 = vsyncpa [#allocation5], 0  ;;  %541 = vmatprep.mubr.msk.f32.mxu0 %vm137_vm1, %v31_v12  ;;  %v32_v14 = vld [vmem:[%s873_s1 + $0x38] sm:$0xff]  ;;  %v46_v15 = vld [vmem:[%s874_s2 + $0x28] sm:$0xff]  ;;  %79 = vperm.xlu0 %621, %v45_v13   ;;  %v676_v35 = vmov 0.0|0.0   ;;  %vm677_vm2 = vmmov 0  }
   0xe   :  { %v33_v16 = vld [vmem:[%s873_s1 + $0x40] sm:$0xff]  ;;  %v47_v17 = vld [vmem:[%s874_s2 + $0x30] sm:$0xff]  ;;  %84 = vperm.xlu1 %622, %v46_v15   ;;  %v34_v18 = vld [vmem:[%s873_s1 + $0x48] sm:$0xff]  ;;  %591 = vmatprep.subr.bf16.mxu1 %v676_v35  ;;  %v678_v36 = vmov 0.0   ;;  %vm428_vm3 = vcmask 59392   ;;  %vm449_vm4 = vcmask 60419  }
   0xf   :  { %v48_v19 = vld [vmem:[%s874_s2 + $0x38] sm:$0xff]  ;;  %v35_v20 = vld [vmem:[%s873_s1 + $0x50] sm:$0xff]  ;;  %v49_v21 = vld [vmem:[%s874_s2 + $0x40] sm:$0xff]  ;;  %588 = vmatprep.mubr.msk.f32.mxu1 %vm677_vm2, %v678_v36 }
  0x10   :  { %542 = vmatmul.mubr.msk.f32.gmra.mrb[6].mxu0 %vm137_vm1, %v32_v14  ;;  %v36_v22 = vld [vmem:[%s873_s1 + $0x58] sm:$0xff]  ;;  %v50_v23 = vld [vmem:[%s874_s2 + $0x48] sm:$0xff]  ;;  %v37_v24 = vld [vmem:[%s873_s1 + $0x60] sm:$0xff] }
  0x11   :  { %544 = vmatprep.mubr.msk.f32.mxu0 %vm137_vm1, %v33_v16  ;;  %89 = vperm.xlu0 %621, %v47_v17   ;;  %v51_v25 = vld [vmem:[%s874_s2 + $0x50] sm:$0xff]  ;;  %v38_v26 = vld [vmem:[%s873_s1 + $0x68] sm:$0xff]  ;;  %v52_v27 = vld [vmem:[%s874_s2 + $0x58] sm:$0xff] }
  0x12   :  { %94 = vperm.xlu1 %622, %v48_v19   ;;  %v39_v28 = vld [vmem:[%s873_s1 + $0x70] sm:$0xff]  ;;  %v53_v29 = vld [vmem:[%s874_s2 + $0x60] sm:$0xff]  ;;  %v40_v30 = vld [vmem:[%s873_s1 + $0x78] sm:$0xff] }
  0x13   :  { %v54_v31 = vld [vmem:[%s874_s2 + $0x68] sm:$0xff]  ;;  %v55_v32 = vld [vmem:[%s874_s2 + $0x70] sm:$0xff]  ;;  %v56_v33 = vld [vmem:[%s874_s2 + $0x78] sm:$0xff] }
  0x14   :  { %545 = vmatmul.mubr.msk.f32.gmra.mrb[8].mxu0 %vm137_vm1, %v34_v18  ;;  %v352_v34 = vld [vmem:[%s876_s4] sm:$0xf]  ;;  %s679_s4 = smov [#allocation4]  }
  0x15   :  { %547 = vmatprep.mubr.msk.f32.mxu0 %vm137_vm1, %v35_v20  ;;  %99 = vperm.xlu0 %621, %v49_v21   ;;  %s467_s14 = sshll.u32 %s679_s4, 4  ;;  %s468_s14 = int_to_ptr.vmem [resolvable:$true] %s467_s14 }
  0x16   :  { %104 = vperm.xlu1 %622, %v50_v23   ;;  %s627_s15 = scalar_lea.vmem %s468_s14, 16  ;;  %s631_s16 = scalar_lea.vmem %s468_s14, 32 }
  0x17   :  { %p628_p0 = scmp.ne.s32.totalorder %s468_s14, %s627_s15  ;;  %p632_p1 = scmp.lt.s32.totalorder %s468_s14, %s468_s14 }
  0x18   :  { %548 = vmatmul.mubr.msk.f32.gmra.mrb[10].mxu0 %vm137_vm1, %v36_v22  ;;  %p633_p2 = scmp.lt.s32.totalorder %s631_s16, %s627_s15 }
  0x19   :  { %550 = vmatprep.mubr.msk.f32.mxu0 %vm137_vm1, %v37_v24  ;;  %109 = vperm.xlu0 %621, %v51_v25  }
  0x1a   :  { %114 = vperm.xlu1 %622, %v52_v27   ;;  %p634_p3 = por %p633_p2, %p632_p1 }
  0x1c   :  { %551 = vmatmul.mubr.msk.f32.gmra.mrb[12].mxu0 %vm137_vm1, %v38_v26  ;;  %p635_p4 = pnand %p634_p3, %p628_p0 }
  0x1d   :  { %553 = vmatprep.mubr.msk.f32.mxu0 %vm137_vm1, %v39_v28  ;;  %119 = vperm.xlu0 %621, %v53_v29  }
  0x1e   :  { %124 = vperm.xlu1 %622, %v54_v31  }
  0x20   :  { %554 = vmatmul.mubr.msk.f32.gmra.mrb[14].mxu0 %vm137_vm1, %v40_v30 }
  0x21   :  { %129 = vperm.xlu0 %621, %v55_v32  }
  0x22   :  { %134 = vperm.xlu1 %622, %v56_v33  }
  0x25   :  { %355 = vperm.xlu0 %621, %v352_v34  }
  0x83   :  { %v70_v37 = vpop.permute.xlu1 %69 }
  0x84   :  { %v60_v38 = vpop.permute.xlu0 %59 }
  0x87   :  { %v75_v39 = vpop.permute.xlu1 %74 }
  0x88   :  { %v65_v40 = vpop.permute.xlu0 %64 }
  0x8c   :  { %v80_v42 = vpop.permute.xlu0 %79 }
  0x8d   :  { %v85_v41 = vpop.permute.xlu1 %84 }
  0x90   :  { %v90_v51 = vpop.permute.xlu0 %89 }
  0x91   :  { %v95_v48 = vpop.permute.xlu1 %94 }
  0x94   :  { %v100_v0 = vpop.permute.xlu0 %99 }
  0x95   :  { %v105_v61 = vpop.permute.xlu1 %104 }
  0x98   :  { %v110_v12 = vpop.permute.xlu0 %109 }
  0x99   :  { %v115_v9 = vpop.permute.xlu1 %114 }
  0x9c   :  { %v120_v25 = vpop.permute.xlu0 %119 }
  0x9d   :  { %v125_v22 = vpop.permute.xlu1 %124 }
  0xa1   :  { %v135_v34 = vpop.permute.xlu1 %134 }
  0xd7   :  { %v534_v43 = vpop.f32.mrb[0].mxu0 }
  0xd8   :  { %v262_v44 = vadd.f32 %v534_v43, %v65_v40  ;;  %v256_v45 = vpop.f32.mrb[1].mxu0 }
  0xd9   :  { %v257_v46 = vadd.f32 %v256_v45, %v60_v38  ;;  %v130_v38 = vpop.permute.xlu0 %129 }
  0xda   :  { %v336_v47 = vmax.f32 %v262_v44, 0.0 }
  0xdb   :  { %v335_v49 = vmax.f32 %v257_v46, 0.0  ;;  %v537_v50 = vpop.f32.mrb[2].mxu0  ;;  %v351_v46 = vld [vmem:[%s875_s3] sm:$0xf] }
  0xdc   :  { %v272_v52 = vadd.f32 %v537_v50, %v75_v39  ;;  %v266_v53 = vpop.f32.mrb[3].mxu0 }
  0xdd   :  { %v267_v54 = vadd.f32 %v266_v53, %v70_v37  ;;  %v592_v55 = vpack.c.bf16 %v336_v47, %v335_v49  ;;  %v356_v47 = vpop.permute.xlu0 %355 }
  0xde   :  { %v338_v56 = vmax.f32 %v272_v52, 0.0 }
  0xdf   :  { %v337_v57 = vmax.f32 %v267_v54, 0.0  ;;  %v540_v58 = vpop.f32.mrb[4].mxu0  ;;  %593 = vmatpush3.bf16.msra.mxu1 %v592_v55 }
  0xe0   :  { %v282_v59 = vadd.f32 %v540_v58, %v85_v41  ;;  %v276_v60 = vpop.f32.mrb[5].mxu0  ;;  %594 = vmatprep.subr.bf16.mxu1 %v676_v35 }
  0xe1   :  { %v595_v62 = vpack.c.bf16 %v338_v56, %v337_v57  ;;  %v277_v63 = vadd.f32 %v276_v60, %v80_v42 }
  0xe2   :  { %v340_v1 = vmax.f32 %v282_v59, 0.0 }
  0xe3   :  { %v339_v2 = vmax.f32 %v277_v63, 0.0  ;;  %v543_v3 = vpop.f32.mrb[6].mxu0  ;;  %596 = vmatpush3.bf16.msra.mxu1 %v595_v62 }
  0xe4   :  { %v292_v4 = vadd.f32 %v543_v3, %v95_v48  ;;  %v286_v5 = vpop.f32.mrb[7].mxu0  ;;  %597 = vmatprep.subr.bf16.mxu1 %v676_v35 }
  0xe5   :  { %v598_v6 = vpack.c.bf16 %v340_v1, %v339_v2  ;;  %v287_v7 = vadd.f32 %v286_v5, %v90_v51 }
  0xe6   :  { %v342_v8 = vmax.f32 %v292_v4, 0.0 }
  0xe7   :  { %v341_v10 = vmax.f32 %v287_v7, 0.0  ;;  %v546_v11 = vpop.f32.mrb[8].mxu0  ;;  %599 = vmatpush3.bf16.msra.mxu1 %v598_v6 }
  0xe8   :  { %v302_v13 = vadd.f32 %v546_v11, %v105_v61  ;;  %v296_v14 = vpop.f32.mrb[9].mxu0  ;;  %600 = vmatprep.subr.bf16.mxu1 %v676_v35 }
  0xe9   :  { %v601_v15 = vpack.c.bf16 %v342_v8, %v341_v10  ;;  %v297_v16 = vadd.f32 %v296_v14, %v100_v0 }
  0xea   :  { %v344_v17 = vmax.f32 %v302_v13, 0.0 }
  0xeb   :  { %v343_v18 = vmax.f32 %v297_v16, 0.0  ;;  %v549_v19 = vpop.f32.mrb[10].mxu0  ;;  %602 = vmatpush3.bf16.msra.mxu1 %v601_v15 }
  0xec   :  { %v312_v20 = vadd.f32 %v549_v19, %v115_v9  ;;  %v306_v21 = vpop.f32.mrb[11].mxu0  ;;  %603 = vmatprep.subr.bf16.mxu1 %v676_v35 }
  0xed   :  { %v604_v23 = vpack.c.bf16 %v344_v17, %v343_v18  ;;  %v307_v24 = vadd.f32 %v306_v21, %v110_v12 }
  0xee   :  { %v346_v26 = vmax.f32 %v312_v20, 0.0 }
  0xef   :  { %v345_v27 = vmax.f32 %v307_v24, 0.0  ;;  %v552_v28 = vpop.f32.mrb[12].mxu0  ;;  %605 = vmatpush3.bf16.msra.mxu1 %v604_v23 }
  0xf0   :  { %v322_v29 = vadd.f32 %v552_v28, %v125_v22  ;;  %v316_v30 = vpop.f32.mrb[13].mxu0  ;;  %606 = vmatprep.subr.bf16.mxu1 %v676_v35 }
  0xf1   :  { %v607_v31 = vpack.c.bf16 %v346_v26, %v345_v27  ;;  %v317_v32 = vadd.f32 %v316_v30, %v120_v25 }
  0xf2   :  { %v348_v33 = vmax.f32 %v322_v29, 0.0 }
  0xf3   :  { %v347_v36 = vmax.f32 %v317_v32, 0.0  ;;  %v555_v37 = vpop.f32.mrb[14].mxu0  ;;  %608 = vmatpush3.bf16.msra.mxu1 %v607_v31 }
  0xf4   :  { %v332_v39 = vadd.f32 %v555_v37, %v135_v34  ;;  %v326_v40 = vpop.f32.mrb[15].mxu0  ;;  %609 = vmatprep.subr.bf16.mxu1 %v676_v35 }
  0xf5   :  { %v610_v41 = vpack.c.bf16 %v348_v33, %v347_v36  ;;  %v327_v42 = vadd.f32 %v326_v40, %v130_v38 }
  0xf6   :  { %v350_v43 = vmax.f32 %v332_v39, 0.0 }
  0xf7   :  { %v349_v44 = vmax.f32 %v327_v42, 0.0  ;;  %611 = vmatpush3.bf16.msra.mxu1 %v610_v41 }
  0xf8   :  { %612 = vmatprep.subr.bf16.mxu1 %v676_v35 }
  0xf9   :  { %v613_v45 = vpack.c.bf16 %v350_v43, %v349_v44 }
  0xfb   :  { %614 = vmatpush3.bf16.msra.mxu1 %v613_v45 }
  0xfe   :  { %589 = vmatmul.mubr.f32.vlgmr.msra.gmra.mrb[0].mxu1 %v351_v46 }
 0x1d1   :  { %v424_v48 = vpop.f32.mrb[0].mxu1 }
 0x1d2   :  { %v425_v49 = vadd.f32 %v424_v48, %v356_v47  ;;  %v590_v50 = vpop.f32.mrb[1].mxu1 }
 0x1d4   :  { %v429_v51 = vsel %vm428_vm3, %v425_v49, -inf  ;;  %450 = vst.msk [vmem:[#allocation4 - $0x3] sm:$0x8] %vm449_vm4, %v425_v49 }
 0x1d5   :  { %v430_v35 = vrot.slane %v429_v51, 4 }
 0x1d6   :  { %638 = shalt.err (!%p635_p4)
}
 0x1d7   :  { %s639_s18 = scalar_lea.hbm %s878_s6, 16 }
 0x1d8   :  { %p640_p5 = scmp.ne.s32.totalorder %s878_s6, %s639_s18  ;;  %p643_p6 = scmp.lt.u32.totalorder %s639_s18, %s878_s6 }
 0x1da   :  { %p645_p7 = pnand %p643_p6, %p640_p5 }
 0x1dc   :  { %648 = shalt.err (!%p645_p7)
}
 0x1dd   :  { %470 = dma.vmem_to_hbm [thread:$0]  %s468_s14, 16, %s878_s6, [#allocation5]   ;;  %v431_v52 = vmax.f32 %v429_v51, %v430_v35 }
 0x1de   :  { %s680_s25 = smov [#allocation2]  }
 0x1df   :  { %v432_v53 = vrot.slane %v431_v52, 2  ;;  %s457_s6 = sshll.u32 %s680_s25, 4  ;;  %s458_s6 = int_to_ptr.vmem [resolvable:$true] %s457_s6 }
 0x1e0   :  { %s649_s26 = scalar_lea.vmem %s458_s6, 64  ;;  %p654_p9 = scmp.lt.s32.totalorder %s458_s6, %s458_s6 }
 0x1e1   :  { %v433_v54 = vmax.f32 %v431_v52, %v432_v53  ;;  %p650_p8 = scmp.ne.s32.totalorder %s458_s6, %s649_s26  ;;  %p655_p10 = scmp.lt.s32.totalorder %s649_s26, %s649_s26 }
 0x1e3   :  { %v434_v55 = vrot.slane %v433_v54, 1  ;;  %p656_p11 = por %p655_p10, %p654_p9 }
 0x1e5   :  { %v435_v56 = vmax.f32 %v433_v54, %v434_v55  ;;  %p657_p12 = pnand %p656_p11, %p650_p8 }
 0x1e7   :  { %v436_v57 = vsub.f32 %v425_v49, %v435_v56 }
 0x1e9   :  { %v437_v58 = vmul.f32 1.442695, %v436_v57 }
 0x1eb   :  { %623 = vpow2.f32 %v437_v58 }
 0x1f5   :  { %v624_v59 = vpop.eup %623 }
 0x1f6   :  { %v439_v60 = vsel %vm428_vm3, %v624_v59, 0.0 }
 0x1f7   :  { %v440_v61 = vrot.slane %v439_v60, 4 }
 0x1f9   :  { %v441_v62 = vadd.f32 %v440_v61, %v439_v60 }
 0x1fb   :  { %v442_v63 = vrot.slane %v441_v62, 2 }
 0x1fd   :  { %v443_v0 = vadd.f32 %v442_v63, %v441_v62 }
 0x1ff   :  { %v444_v1 = vrot.slane %v443_v0, 1 }
 0x201   :  { %v445_v2 = vadd.f32 %v444_v1, %v443_v0 }
 0x203   :  { %625 = vrcp.f32 %v445_v2 }
 0x20d   :  { %v626_v3 = vpop.eup %625 }
 0x20e   :  { %v447_v4 = vmul.f32 %v626_v3, %v624_v59 }
 0x210   :  { %448 = vst.msk [vmem:[#allocation2] sm:$0x7] %vm428_vm3, %v447_v4 }
 0x211   :  { %660 = shalt.err (!%p657_p12)
}
 0x212   :  { %s661_s0 = scalar_lea.hbm %s877_s5, 64 }
 0x213   :  { %p662_p13 = scmp.ne.s32.totalorder %s877_s5, %s661_s0  ;;  %p665_p0 = scmp.lt.u32.totalorder %s661_s0, %s877_s5 }
 0x215   :  { %p667_p1 = pnand %p665_p0, %p662_p13 }
 0x217   :  { %670 = shalt.err (!%p667_p1)
}
 0x218   :  { %460 = dma.vmem_to_hbm [thread:$0]  %s458_s6, 64, %s877_s5, [#allocation3]  }
 0x219   :  { %671 = dma.done.wait [#allocation3], 64  }
 0x21a   :  { %672 = vsyncadd [#allocation3], 4294967232 }
 0x21b   :  { %673 = dma.done.wait [#allocation5], 16  }
 0x21c   :  { %674 = vsyncadd [#allocation5], 4294967280 }
 0x21d   :  { %477 = vsyncpa [#allocation3], 1 }
 0x21e   :  { %478 = vsyncpa [#allocation5], 1 }

</bundles_post_ra>
